<compile_context>
chip_gen: v6e
topology: v6e:2x2x1
jax: 0.10.0
libtpu: 0.0.40
codegen_flags: <defaults>
</compile_context>

<pallas_src>
import jax
import jax.numpy as jnp
from jax import lax
from jax.experimental import pallas as pl
from jax.experimental.pallas import tpu as pltpu


def _round_up(x, m):
    return (x + m - 1) // m * m


# ---------------------------------------------------------------------------
# Kernel 1: batched projection  out = x @ w + b   (fully parallel grid)
# Used twice: input-gate precompute (T1*B, E)@(E, 4Hp) and FC (T1*B, Hp)@(Hp, Vp).
# ---------------------------------------------------------------------------
def _matmul_bias_kernel(x_ref, w_ref, b_ref, o_ref):
    acc = jnp.dot(x_ref[...], w_ref[...], preferred_element_type=jnp.float32)
    o_ref[...] = (acc + b_ref[...]).astype(o_ref.dtype)


def matmul_bias(x, w, b, out_dtype=jnp.float32, tr_max=256, tn_max=512):
    """x: (R, K), w: (K, N), b: (1, N) -> (R, N) in out_dtype (f32 accumulation)."""
    R, K = x.shape
    N = w.shape[1]
    TR = min(tr_max, _round_up(R, 8))
    TN = min(tn_max, _round_up(N, 128))
    R_pad = _round_up(R, TR)
    N_pad = _round_up(N, TN)
    x_p = jnp.pad(x, ((0, R_pad - R), (0, 0)))
    w_p = jnp.pad(w, ((0, 0), (0, N_pad - N)))
    b_p = jnp.pad(b, ((0, 0), (0, N_pad - N)))
    out = pl.pallas_call(
        _matmul_bias_kernel,
        out_shape=jax.ShapeDtypeStruct((R_pad, N_pad), out_dtype),
        grid=(R_pad // TR, N_pad // TN),
        in_specs=[
            pl.BlockSpec((TR, K), lambda i, j: (i, 0)),
            pl.BlockSpec((K, TN), lambda i, j: (0, j)),
            pl.BlockSpec((1, TN), lambda i, j: (0, j)),
        ],
        out_specs=pl.BlockSpec((TR, TN), lambda i, j: (i, j)),
        compiler_params=pltpu.CompilerParams(
            dimension_semantics=("parallel", "parallel")),
    )(x_p, w_p, b_p)
    return out[:R, :N]


# ---------------------------------------------------------------------------
# Kernel 2: LSTM recurrence.  Single invocation (no time grid); unrolled
# in-kernel loop, one MXU matmul per step, f32 state, 128-lane-aligned gates.
# ---------------------------------------------------------------------------
def _lstm_recurrence_kernel(xg_ref, wh_ref, h_out_ref):
    T1, B, G4 = xg_ref.shape
    Hp = G4 // 4
    wh = wh_ref[...]                                   # (Hp, 4*Hp) bf16, loaded once

    def step(t, carry):
        h, c = carry                                   # f32 (B, Hp)
        gates = xg_ref[t] + jnp.dot(h.astype(jnp.bfloat16), wh,
                                    preferred_element_type=jnp.float32)
        # PyTorch LSTM gate order: i, f, g, o; each slice starts on a 128-lane boundary.
        i_g = jax.nn.sigmoid(gates[:, 0 * Hp:1 * Hp])
        f_g = jax.nn.sigmoid(gates[:, 1 * Hp:2 * Hp])
        g_g = jnp.tanh(gates[:, 2 * Hp:3 * Hp])
        o_g = jax.nn.sigmoid(gates[:, 3 * Hp:4 * Hp])
        c_new = f_g * c + i_g * g_g
        h_new = o_g * jnp.tanh(c_new)
        h_out_ref[t] = h_new.astype(h_out_ref.dtype)
        return (h_new, c_new)

    init = (jnp.zeros((B, Hp), jnp.float32),
            jnp.zeros((B, Hp), jnp.float32))
    lax.fori_loop(0, T1, step, init, unroll=True)


# ---------------------------------------------------------------------------
# Weight preparation: PyTorch-layout f32 params -> padded / transposed / bf16.
# ---------------------------------------------------------------------------
def _pad_gate_cols(w_t, H, Hp):
    """(K, 4H) -> (K, 4Hp): each gate block placed at a 128-lane boundary, zero pad."""
    K = w_t.shape[0]
    out = jnp.zeros((K, 4 * Hp), w_t.dtype)
    for g in range(4):
        out = out.at[:, g * Hp:g * Hp + H].set(w_t[:, g * H:(g + 1) * H])
    return out


def prepare_kernel_params(params):
    H = params["w_hh"].shape[1]
    V = params["w_fc"].shape[0]
    Hp = _round_up(H, 128)            # per-gate lane-aligned hidden width
    Vp = _round_up(V, 128)

    w_x = _pad_gate_cols(params["w_ih"].T, H, Hp)                       # (E, 4Hp)
    w_h = _pad_gate_cols(params["w_hh"].T, H, Hp)                       # (H, 4Hp)
    w_h = jnp.pad(w_h, ((0, Hp - H), (0, 0)))                           # (Hp, 4Hp)
    b_g = _pad_gate_cols((params["b_ih"] + params["b_hh"])[None, :], H, Hp)  # (1, 4Hp)

    w_fc = jnp.pad(params["w_fc"].T, ((0, Hp - H), (0, Vp - V)))        # (Hp, Vp)
    b_fc = jnp.pad(params["b_fc"][None, :], ((0, 0), (0, Vp - V)))      # (1, Vp)

    return {
        "embedding": params["embedding"],
        "w_x": w_x.astype(jnp.bfloat16),
        "w_h": w_h.astype(jnp.bfloat16),
        "b_gates": b_g.astype(jnp.float32),
        "w_fc": w_fc.astype(jnp.bfloat16),
        "b_fc": b_fc.astype(jnp.float32),
        "H": H, "Hp": Hp, "V": V, "Vp": Vp,
    }


# ---------------------------------------------------------------------------
# Forward pass (matches DecoderRNN.forward)
# ---------------------------------------------------------------------------
def decoder_forward(features, captions, kp):
    """features: (B, E) f32, captions: (B, T) int32 -> logits (B, T+1, V)."""
    emb = jnp.take(kp["embedding"], captions, axis=0)                   # (B, T, E) glue
    inputs = jnp.concatenate([features[:, None, :], emb], axis=1)       # (B, T1, E)
    B, T1, E = inputs.shape
    Hp, V, Vp = kp["Hp"], kp["V"], kp["Vp"]
    B_pad = _round_up(B, 8)

    x = jnp.transpose(inputs, (1, 0, 2))                                # (T1, B, E)
    x = jnp.pad(x, ((0, 0), (0, B_pad - B), (0, 0)))

    # 1) Batched input-gate projection (parallel, out of the recurrence):
    #    xg[t] = x[t] @ W_ih^T + (b_ih + b_hh)
    xg = matmul_bias(x.reshape(T1 * B_pad, E).astype(jnp.bfloat16),
                     kp["w_x"], kp["b_gates"], out_dtype=jnp.float32)
    xg = xg.reshape(T1, B_pad, 4 * Hp)

    # 2) Recurrence: one pallas_call, unrolled over time, one matmul per step.
    h_all = pl.pallas_call(
        _lstm_recurrence_kernel,
        out_shape=jax.ShapeDtypeStruct((T1, B_pad, Hp), jnp.bfloat16),
        in_specs=[pl.BlockSpec(memory_space=pltpu.MemorySpace.VMEM),
                  pl.BlockSpec(memory_space=pltpu.MemorySpace.VMEM)],
        out_specs=pl.BlockSpec(memory_space=pltpu.MemorySpace.VMEM),
    )(xg, kp["w_h"])

    # 3) Hoisted FC projection (parallel grid, lane-dense V tiles).
    logits = matmul_bias(h_all.reshape(T1 * B_pad, Hp), kp["w_fc"], kp["b_fc"],
                         out_dtype=jnp.float32)
    logits = logits.reshape(T1, B_pad, Vp)[:, :B, :V]
    return jnp.transpose(logits, (1, 0, 2))                             # (B, T1, V)


# ---------------------------------------------------------------------------
# Pure-JAX f32 reference (mirrors torch.nn.LSTM batch_first + Linear)
# ---------------------------------------------------------------------------
def reference_forward(features, captions, params):
    emb = jnp.take(params["embedding"], captions, axis=0)
    inputs = jnp.concatenate([features[:, None, :], emb], axis=1)
    B, T1, _ = inputs.shape
    H = params["w_hh"].shape[1]
    w_ih_t = params["w_ih"].T
    w_hh_t = params["w_hh"].T
    b = params["b_ih"] + params["b_hh"]
    h = jnp.zeros((B, H), jnp.float32)
    c = jnp.zeros((B, H), jnp.float32)
    outs = []
    for t in range(T1):
        gates = inputs[:, t, :] @ w_ih_t + h @ w_hh_t + b
        i_g = jax.nn.sigmoid(gates[:, 0 * H:1 * H])
        f_g = jax.nn.sigmoid(gates[:, 1 * H:2 * H])
        g_g = jnp.tanh(gates[:, 2 * H:3 * H])
        o_g = jax.nn.sigmoid(gates[:, 3 * H:4 * H])
        c = f_g * c + i_g * g_g
        h = o_g * jnp.tanh(c)
        outs.append(h @ params["w_fc"].T + params["b_fc"])
    return jnp.stack(outs, axis=1)


def init_params(key, embed_size, hidden_size, vocab_size):
    """Deterministic synthetic weights in PyTorch layout, uniform(-1/sqrt(H), 1/sqrt(H))."""
    ks = jax.random.split(key, 7)
    s = 1.0 / jnp.sqrt(hidden_size)
    u = lambda k, shape: jax.random.uniform(k, shape, jnp.float32, -s, s)
    return {
        "embedding": jax.random.normal(ks[0], (vocab_size, embed_size), jnp.float32),
        "w_ih": u(ks[1], (4 * hidden_size, embed_size)),
        "w_hh": u(ks[2], (4 * hidden_size, hidden_size)),
        "b_ih": u(ks[3], (4 * hidden_size,)),
        "b_hh": u(ks[4], (4 * hidden_size,)),
        "w_fc": u(ks[5], (vocab_size, hidden_size)),
        "b_fc": u(ks[6], (vocab_size,)),
    }


if __name__ == "__main__":
    EMBED, HIDDEN, VOCAB = 32, 32, 128
    BATCH, SEQ = 8, 7            # captions length 7 -> 8 LSTM steps (features prepended)

    key = jax.random.PRNGKey(0)
    k_feat, k_cap, k_par = jax.random.split(key, 3)

    features = jax.random.normal(k_feat, (BATCH, EMBED), jnp.float32)   # CNN features
    captions = jax.random.randint(k_cap, (BATCH, SEQ), 0, VOCAB, jnp.int32)
    params = init_params(k_par, EMBED, HIDDEN, VOCAB)
    kparams = prepare_kernel_params(params)

    out = decoder_forward(features, captions, kparams)
    out = jax.block_until_ready(out)

    ref = reference_forward(features, captions, params)
    assert out.shape == (BATCH, SEQ + 1, VOCAB), out.shape
    max_err = float(jnp.max(jnp.abs(out - ref)))
    # bf16 matmul operands (f32 accumulation, f32 h/c state) -> loosened tolerance.
    assert jnp.allclose(out, ref, atol=3e-2, rtol=3e-2), max_err

    # TODO(synk): the torch-side host glue (captions['input_ids'] dict unpacking,
    # .numpy()/.to(device)) has no device-kernel equivalent; inputs are taken as arrays.
    print("KERNEL_OK")
</pallas_src>

<mosaic_0001>
module attributes {stable_mosaic.version = 11 : i64} {
  func.func @_matmul_bias_kernel(%arg0: i32, %arg1: i32, %arg2: memref<64x32xbf16, #tpu.memory_space<vmem>>, %arg3: memref<32x512xbf16, #tpu.memory_space<vmem>>, %arg4: memref<1x512xf32, #tpu.memory_space<vmem>>, %arg5: memref<64x512xf32, #tpu.memory_space<vmem>>) attributes {dimension_semantics = [#tpu.dimension_semantics<parallel>, #tpu.dimension_semantics<parallel>], iteration_bounds = array<i64: 1, 1>, scalar_prefetch = 0 : i64, scratch_operands = 0 : i64, tpu.core_type = #tpu.core_type<tc>, window_params = [{transform_indices = @transform_0, window_bounds = array<i64: 64, 32>}, {transform_indices = @transform_1, window_bounds = array<i64: 32, 512>}, {transform_indices = @transform_2, window_bounds = array<i64: 1, 512>}, {transform_indices = @transform_3, window_bounds = array<i64: 64, 512>}]} {
    %c0 = arith.constant 0 : index
    %c0_0 = arith.constant 0 : index
    %0 = vector.load %arg2[%c0, %c0_0] : memref<64x32xbf16, #tpu.memory_space<vmem>>, vector<64x32xbf16>
    %c0_1 = arith.constant 0 : index
    %c0_2 = arith.constant 0 : index
    %1 = vector.load %arg3[%c0_1, %c0_2] : memref<32x512xbf16, #tpu.memory_space<vmem>>, vector<32x512xbf16>
    %cst = arith.constant dense<0.000000e+00> : vector<64x512xf32>
    %2 = tpu.matmul %0, %1, %cst {dimension_numbers = #tpu.dot_dimension_numbers<[1], [0], [0], [1], [0, 0, 1, 1], [], []>} : vector<64x32xbf16>, vector<32x512xbf16>, vector<64x512xf32> -> vector<64x512xf32>
    %c0_3 = arith.constant 0 : index
    %c0_4 = arith.constant 0 : index
    %3 = vector.load %arg4[%c0_3, %c0_4] : memref<1x512xf32, #tpu.memory_space<vmem>>, vector<1x512xf32>
    %4 = vector.broadcast %3 : vector<1x512xf32> to vector<64x512xf32>
    %5 = arith.addf %2, %4 : vector<64x512xf32>
    %c0_5 = arith.constant 0 : index
    %c0_6 = arith.constant 0 : index
    %6 = vector.load %arg5[%c0_5, %c0_6] : memref<64x512xf32, #tpu.memory_space<vmem>>, vector<64x512xf32>
    tpu.vector_store %arg5[%c0_5, %c0_6], %5 {strides = array<i32>} : memref<64x512xf32, #tpu.memory_space<vmem>>, vector<64x512xf32>,
    return
  }
  func.func @transform_0(%arg0: i32, %arg1: i32) -> (i32, i32) {
    %c0_i32 = arith.constant 0 : i32
    %c0_i32_0 = arith.constant 0 : i32
    return %arg0, %c0_i32 : i32, i32
  }
  func.func @transform_1(%arg0: i32, %arg1: i32) -> (i32, i32) {
    %c0_i32 = arith.constant 0 : i32
    %c0_i32_0 = arith.constant 0 : i32
    return %c0_i32, %arg1 : i32, i32
  }
  func.func @transform_2(%arg0: i32, %arg1: i32) -> (i32, i32) {
    %c0_i32 = arith.constant 0 : i32
    %c0_i32_0 = arith.constant 0 : i32
    return %c0_i32, %arg1 : i32, i32
  }
  func.func @transform_3(%arg0: i32, %arg1: i32) -> (i32, i32) {
    %c0_i32 = arith.constant 0 : i32
    return %arg0, %arg1 : i32, i32
  }
}

</mosaic_0001>

<bundles_post_ra>
// kernel: tpu_custom_call.1
= control target key start
LH: loop header
LB: loop body
LE: loop exit
PB: predicated region body
PF: predicated region fallthrough
CT: control target
= control target key end

     0   :  { %8 = vsyncpa [#allocation3], 0  ;;  %s519_s0 = inlined_call_operand.vmem [shape: bf16[64,32], index: 0, kind: input, shape index: {}]   ;;  %s520_s1 = inlined_call_operand.hbm [shape: bf16[32,512], index: 1, kind: input, shape index: {}]   ;;  %s521_s2 = inlined_call_operand.vmem [shape: f32[1,512], index: 2, kind: input, shape index: {}]   ;;  %s522_s3 = inlined_call_operand.hbm [shape: f32[64,512], index: 3, kind: output, shape index: {}]  }
   0x1   :  { %9 = vsyncpa [#allocation4], 0  ;;  %s423_s12 = smov [#allocation2]  }
   0x2   :  { %s17_s13 = sshll.u32 %s423_s12, 4  ;;  %s18_s13 = int_to_ptr.vmem [resolvable:$true] %s17_s13 }
   0x3   :  { %s387_s14 = scalar_lea.vmem %s18_s13, 1024  ;;  %p392_p1 = scmp.lt.s32.totalorder %s18_s13, %s18_s13 }
   0x4   :  { %p388_p0 = scmp.ne.s32.totalorder %s18_s13, %s387_s14  ;;  %p393_p2 = scmp.lt.s32.totalorder %s387_s14, %s387_s14 }
   0x6   :  { %p394_p3 = por %p393_p2, %p392_p1 }
   0x8   :  { %p395_p4 = pnand %p394_p3, %p388_p0 }
   0xa   :  { %398 = shalt.err (!%p395_p4)
}
   0xb   :  { %s424_s15 = smov 256   ;;  %s425_s16 = smov 16  }
   0xc   :  { %23 = dma.hbm_to_vmem [thread:$0]  %s520_s1, 1024, %s18_s13, [#allocation3], %s424_s15, %s424_s15, %s425_s16  }
   0xd   :  { %419 = dma.done.wait [#allocation3], 1024  }
   0xe   :  { %420 = vsyncadd [#allocation3], 4294966272  ;;  %v426_v0 = vmov 0   ;;  %v363_v1 = vld [vmem:[#allocation2 + $0x24] ss:$16 sps:$4 sm:$0xff]   ;;  %vm128_vm0 = vcmask 261120   ;;  %v48_v13 = vlaneseq }
   0xf   :  { %173 = vmatprep.mubr.bf16.mxu0 %v426_v0  ;;  %246 = vmatprep.mubr.bf16.mxu1 %v426_v0  ;;  %v365_v2 = vld [vmem:[#allocation2 + $0x2c] ss:$16 sps:$4 sm:$0xff]   ;;  %v367_v3 = vld [vmem:[#allocation2 + $0x20] ss:$16 sps:$4 sm:$0xff]   ;;  %v368_v4 = vld [vmem:[#allocation2 + $0x28] ss:$16 sps:$4 sm:$0xff]  }
  0x10   :  { %153 = vmatprep.subr.bf16.mxu0 %v363_v1  ;;  %226 = vmatprep.subr.bf16.mxu1 %v365_v2  ;;  %v369_v5 = vld [vmem:[#allocation2 + $0x4] ss:$16 sps:$4 sm:$0xff]   ;;  %v371_v6 = vld [vmem:[#allocation2 + $0xc] ss:$16 sps:$4 sm:$0xff]   ;;  %v373_v7 = vld [vmem:[#allocation2] ss:$16 sps:$4 sm:$0xff]  }
  0x11   :  { %154 = vmatpush1.bf16.msra.mxu0 %v367_v3  ;;  %227 = vmatpush1.bf16.msra.mxu1 %v368_v4  ;;  %v374_v8 = vld [vmem:[#allocation2 + $0x8] ss:$16 sps:$4 sm:$0xff]   ;;  %v375_v9 = vld [vmem:[%s519_s0] sm:$0xff]   ;;  %v377_v11 = vld [vmem:[%s519_s0 + $0x10] sm:$0xff]   ;;  %v49_v14 = vshrl.u32 %v48_v13, 7 }
  0x12   :  { %155 = vmatprep.subr.bf16.mxu0 %v369_v5  ;;  %228 = vmatprep.subr.bf16.mxu1 %v371_v6  ;;  %v376_v10 = vld [vmem:[%s519_s0 + $0x8] sm:$0xff]   ;;  %v378_v12 = vld [vmem:[%s519_s0 + $0x18] sm:$0xff]   ;;  %v46_v17 = vld [vmem:[%s521_s2] sm:$0xf]  ;;  %s427_s0 = smov [#allocation5]  }
  0x13   :  { %v50_v15 = vsub.s32 0, %v49_v14  ;;  %v58_v16 = vsub.s32 2, %v49_v14  ;;  %v54_v18 = vsub.s32 1, %v49_v14  ;;  %v62_v19 = vsub.s32 3, %v49_v14  ;;  %s324_s2 = sshll.u32 %s427_s0, 4  ;;  %s325_s2 = int_to_ptr.vmem [resolvable:$true] %s324_s2 }
  0x14   :  { %s399_s28 = scalar_lea.vmem %s325_s2, 4096  ;;  %p404_p6 = scmp.lt.s32.totalorder %s325_s2, %s325_s2 }
  0x15   :  { %156 = vmatpush1.bf16.msra.mxu0 %v373_v7  ;;  %229 = vmatpush1.bf16.msra.mxu1 %v374_v8  ;;  %v476_v20 = vrot.slane %v46_v17, %v50_v15  ;;  %v478_v21 = vrot.slane %v46_v17, %v58_v16  ;;  %v480_v22 = vrot.slane %v46_v17, %v54_v18  ;;  %p400_p5 = scmp.ne.s32.totalorder %s325_s2, %s399_s28  ;;  %p405_p7 = scmp.lt.s32.totalorder %s399_s28, %s399_s28 }
  0x16   :  { %v482_v23 = vrot.slane %v46_v17, %v62_v19 }
  0x17   :  { %p406_p8 = por %p405_p7, %p404_p6 }
  0x18   :  { %348 = vmatmul.mubr.msk.bf16.vlgmr.msra.gmra.mxu0 %vm128_vm0, %v375_v9  ;;  %352 = vmatmul.mubr.msk.bf16.vlgmr.msra.gmra.mxu1 %vm128_vm0, %v375_v9 }
  0x19   :  { %183 = vmatprep.mubr.bf16.mxu0 %v426_v0  ;;  %256 = vmatprep.mubr.bf16.mxu1 %v426_v0  ;;  %p407_p9 = pnand %p406_p8, %p400_p5 }
  0x20   :  { %349 = vmatmul.mubr.msk.bf16.gmra.mxu0 %vm128_vm0, %v376_v10  ;;  %353 = vmatmul.mubr.msk.bf16.gmra.mxu1 %vm128_vm0, %v376_v10 }
  0x21   :  { %193 = vmatprep.mubr.bf16.mxu0 %v426_v0  ;;  %266 = vmatprep.mubr.bf16.mxu1 %v426_v0 }
  0x28   :  { %350 = vmatmul.mubr.msk.bf16.gmra.mxu0 %vm128_vm0, %v377_v11  ;;  %354 = vmatmul.mubr.msk.bf16.gmra.mxu1 %vm128_vm0, %v377_v11 }
  0x29   :  { %203 = vmatprep.mubr.bf16.mxu0 %v426_v0  ;;  %276 = vmatprep.mubr.bf16.mxu1 %v426_v0 }
  0x30   :  { %351 = vmatmul.mubr.msk.bf16.gmra.mxu0 %vm128_vm0, %v378_v12  ;;  %355 = vmatmul.mubr.msk.bf16.gmra.mxu1 %vm128_vm0, %v378_v12 }
  0xd8   :  { %v175_v24 = vpop.f32.mrf.mxu0  ;;  %v248_v25 = vpop.f32.mrf.mxu1 }
  0xd9   :  { %v176_v26 = vadd.f32 %v175_v24, %v476_v20  ;;  %v249_v27 = vadd.f32 %v248_v25, %v478_v21 }
  0xda   :  { %v177_v28 = vpop.f32.mrf.mxu0  ;;  %v250_v29 = vpop.f32.mrf.mxu1 }
  0xdb   :  { %287 = vst [vmem:[#allocation5] sm:$0xff] %v176_v26  ;;  %289 = vst [vmem:[#allocation5 + $0x10] sm:$0xff] %v249_v27  ;;  %v178_v30 = vadd.f32 %v177_v28, %v480_v22  ;;  %v251_v31 = vadd.f32 %v250_v29, %v482_v23 }
  0xdc   :  { %v179_v32 = vpop.f32.mrf.mxu0  ;;  %v252_v33 = vpop.f32.mrf.mxu1 }
  0xdd   :  { %288 = vst [vmem:[#allocation5 + $0x8] sm:$0xff] %v178_v30  ;;  %290 = vst [vmem:[#allocation5 + $0x18] sm:$0xff] %v251_v31  ;;  %v180_v34 = vadd.f32 %v179_v32, %v476_v20  ;;  %v253_v35 = vadd.f32 %v252_v33, %v478_v21 }
  0xde   :  { %v181_v36 = vpop.f32.mrf.mxu0  ;;  %v254_v37 = vpop.f32.mrf.mxu1 }
  0xdf   :  { %291 = vst [vmem:[#allocation5 + $0x20] sm:$0xff] %v180_v34  ;;  %293 = vst [vmem:[#allocation5 + $0x30] sm:$0xff] %v253_v35  ;;  %v182_v38 = vadd.f32 %v181_v36, %v480_v22  ;;  %v255_v39 = vadd.f32 %v254_v37, %v482_v23 }
  0xe0   :  { %v185_v40 = vpop.f32.mrf.mxu0  ;;  %v258_v41 = vpop.f32.mrf.mxu1 }
  0xe1   :  { %292 = vst [vmem:[#allocation5 + $0x28] sm:$0xff] %v182_v38  ;;  %294 = vst [vmem:[#allocation5 + $0x38] sm:$0xff] %v255_v39  ;;  %v186_v42 = vadd.f32 %v185_v40, %v476_v20  ;;  %v259_v43 = vadd.f32 %v258_v41, %v478_v21 }
  0xe2   :  { %v187_v44 = vpop.f32.mrf.mxu0  ;;  %v260_v45 = vpop.f32.mrf.mxu1 }
  0xe3   :  { %295 = vst [vmem:[#allocation5 + $0x40] sm:$0xff] %v186_v42  ;;  %297 = vst [vmem:[#allocation5 + $0x50] sm:$0xff] %v259_v43  ;;  %v188_v46 = vadd.f32 %v187_v44, %v480_v22  ;;  %v261_v47 = vadd.f32 %v260_v45, %v482_v23 }
  0xe4   :  { %v189_v48 = vpop.f32.mrf.mxu0  ;;  %v262_v49 = vpop.f32.mrf.mxu1 }
  0xe5   :  { %296 = vst [vmem:[#allocation5 + $0x48] sm:$0xff] %v188_v46  ;;  %298 = vst [vmem:[#allocation5 + $0x58] sm:$0xff] %v261_v47  ;;  %v190_v50 = vadd.f32 %v189_v48, %v476_v20  ;;  %v263_v51 = vadd.f32 %v262_v49, %v478_v21 }
  0xe6   :  { %v191_v52 = vpop.f32.mrf.mxu0  ;;  %v264_v53 = vpop.f32.mrf.mxu1 }
  0xe7   :  { %299 = vst [vmem:[#allocation5 + $0x60] sm:$0xff] %v190_v50  ;;  %301 = vst [vmem:[#allocation5 + $0x70] sm:$0xff] %v263_v51  ;;  %v192_v54 = vadd.f32 %v191_v52, %v480_v22  ;;  %v265_v55 = vadd.f32 %v264_v53, %v482_v23 }
  0xe8   :  { %v195_v56 = vpop.f32.mrf.mxu0  ;;  %v268_v57 = vpop.f32.mrf.mxu1 }
  0xe9   :  { %300 = vst [vmem:[#allocation5 + $0x68] sm:$0xff] %v192_v54  ;;  %302 = vst [vmem:[#allocation5 + $0x78] sm:$0xff] %v265_v55  ;;  %v196_v58 = vadd.f32 %v195_v56, %v476_v20  ;;  %v269_v59 = vadd.f32 %v268_v57, %v478_v21 }
  0xea   :  { %v197_v60 = vpop.f32.mrf.mxu0  ;;  %v270_v61 = vpop.f32.mrf.mxu1 }
  0xeb   :  { %303 = vst [vmem:[#allocation5 + $0x80] sm:$0xff] %v196_v58  ;;  %305 = vst [vmem:[#allocation5 + $0x90] sm:$0xff] %v269_v59  ;;  %v198_v62 = vadd.f32 %v197_v60, %v480_v22  ;;  %v271_v63 = vadd.f32 %v270_v61, %v482_v23 }
  0xec   :  { %v199_v0 = vpop.f32.mrf.mxu0  ;;  %v272_v1 = vpop.f32.mrf.mxu1 }
  0xed   :  { %304 = vst [vmem:[#allocation5 + $0x88] sm:$0xff] %v198_v62  ;;  %306 = vst [vmem:[#allocation5 + $0x98] sm:$0xff] %v271_v63  ;;  %v200_v2 = vadd.f32 %v199_v0, %v476_v20  ;;  %v273_v3 = vadd.f32 %v272_v1, %v478_v21 }
  0xee   :  { %v201_v4 = vpop.f32.mrf.mxu0  ;;  %v274_v5 = vpop.f32.mrf.mxu1 }
  0xef   :  { %307 = vst [vmem:[#allocation5 + $0xa0] sm:$0xff] %v200_v2  ;;  %309 = vst [vmem:[#allocation5 + $0xb0] sm:$0xff] %v273_v3  ;;  %v202_v6 = vadd.f32 %v201_v4, %v480_v22  ;;  %v275_v7 = vadd.f32 %v274_v5, %v482_v23 }
  0xf0   :  { %v205_v8 = vpop.f32.mrf.mxu0  ;;  %v278_v9 = vpop.f32.mrf.mxu1 }
  0xf1   :  { %308 = vst [vmem:[#allocation5 + $0xa8] sm:$0xff] %v202_v6  ;;  %310 = vst [vmem:[#allocation5 + $0xb8] sm:$0xff] %v275_v7  ;;  %v206_v10 = vadd.f32 %v205_v8, %v476_v20  ;;  %v279_v11 = vadd.f32 %v278_v9, %v478_v21 }
  0xf2   :  { %v207_v12 = vpop.f32.mrf.mxu0  ;;  %v280_v13 = vpop.f32.mrf.mxu1 }
  0xf3   :  { %311 = vst [vmem:[#allocation5 + $0xc0] sm:$0xff] %v206_v10  ;;  %313 = vst [vmem:[#allocation5 + $0xd0] sm:$0xff] %v279_v11  ;;  %v208_v14 = vadd.f32 %v207_v12, %v480_v22  ;;  %v281_v15 = vadd.f32 %v280_v13, %v482_v23 }
  0xf4   :  { %v209_v16 = vpop.f32.mrf.mxu0  ;;  %v282_v17 = vpop.f32.mrf.mxu1 }
  0xf5   :  { %312 = vst [vmem:[#allocation5 + $0xc8] sm:$0xff] %v208_v14  ;;  %314 = vst [vmem:[#allocation5 + $0xd8] sm:$0xff] %v281_v15  ;;  %v210_v18 = vadd.f32 %v209_v16, %v476_v20  ;;  %v283_v19 = vadd.f32 %v282_v17, %v478_v21 }
  0xf6   :  { %v211_v24 = vpop.f32.mrf.mxu0  ;;  %v284_v25 = vpop.f32.mrf.mxu1 }
  0xf7   :  { %315 = vst [vmem:[#allocation5 + $0xe0] sm:$0xff] %v210_v18  ;;  %317 = vst [vmem:[#allocation5 + $0xf0] sm:$0xff] %v283_v19  ;;  %v212_v26 = vadd.f32 %v211_v24, %v480_v22  ;;  %v285_v27 = vadd.f32 %v284_v25, %v482_v23 }
  0xf9   :  { %316 = vst [vmem:[#allocation5 + $0xe8] sm:$0xff] %v212_v26  ;;  %318 = vst [vmem:[#allocation5 + $0xf8] sm:$0xff] %v285_v27 }
  0xfa   :  { %410 = shalt.err (!%p407_p9)
}
  0xfb   :  { %s428_s29 = smov 512   ;;  %s429_s30 = smov 32  }
  0xfc   :  { %330 = dma.vmem_to_hbm [thread:$0]  %s325_s2, 4096, %s522_s3, [#allocation4], %s428_s29, %s428_s29, %s429_s30  }
  0xfd   :  { %421 = dma.done.wait [#allocation4], 4096  }
  0xfe   :  { %422 = vsyncadd [#allocation4], 4294963200 }
  0xff   :  { %334 = vsyncpa [#allocation3], 1 }
 0x100   :  { %335 = vsyncpa [#allocation4], 1 }

</bundles_post_ra>
